<compile_context>
chip_gen: v7x
topology: tpu7x:2x2x1
jax: 0.10.0
libtpu: 0.0.40
codegen_flags: <defaults>
</compile_context>

<pallas_src>
import math
import functools

import jax
import jax.numpy as jnp
from jax.experimental import pallas as pl
from jax.experimental.pallas import tpu as pltpu


COMPUTE_DTYPE = jnp.bfloat16   # MXU-friendly on v5e/v6e/v7x; accumulate in f32


# ---------------------------------------------------------------------------
# Host-side weight prep (run ONCE per weight set, outside the jitted forward):
# banded 3x3 conv weights with width-padding folded in and output columns
# permuted so PixelShuffle(r) becomes a free reshape.
# ---------------------------------------------------------------------------
def _prep_stage_weights(w_hwio, bias, W, r, compute_dtype=COMPUTE_DTYPE):
    """HWIO (3,3,C,OC) -> rhs (3*W*C, W*OC) bf16, brow (1, W*OC) f32.

    rhs row index  = dy*(W*C) + p*C + c          (p = source column)
    rhs col index  = ((i*W + w)*r + j)*C2 + c2   (oc = c2*r*r + i*r + j)
    Out-of-range width taps (w + dy_x - 1 outside [0, W)) are dropped, which
    implements the SAME padding in width with no padded input columns.
    """
    KH, KW, C, OC = w_hwio.shape
    C2 = OC // (r * r)
    wf = w_hwio.astype(jnp.float32)

    p = jnp.arange(W)[:, None, None]      # source column
    q = jnp.arange(W)[None, :, None]      # output column
    d = jnp.arange(KW)[None, None, :]     # kernel dx
    sel = (p == q + d - 1).astype(jnp.float32)           # (W, W, KW); drops edge taps
    rhs = jnp.einsum("pwd,ydco->ypcwo", sel, wf)         # (KH, W, C, W, OC)
    rhs = rhs.reshape(KH, W, C, W, C2, r, r)             # oc = c2*r*r + i*r + j
    rhs = jnp.transpose(rhs, (0, 1, 2, 5, 3, 6, 4))      # (dy, p, c, i, w, j, c2)
    rhs = rhs.reshape(KH * W * C, r * W * r * C2).astype(compute_dtype)

    b3 = jnp.transpose(bias.astype(jnp.float32).reshape(C2, r, r), (1, 2, 0))  # (i,j,c2)
    brow = jnp.broadcast_to(b3[:, None, :, :], (r, W, r, C2)).reshape(1, r * W * r * C2)
    return rhs, brow


# ---------------------------------------------------------------------------
# Pallas kernel: fused 3x3 SAME conv + bias + ReLU, output columns pre-ordered
# for the pixel shuffle.  One MXU matmul per image, K = 3*W*C.
# ---------------------------------------------------------------------------
def _conv3x3_relu_shuffled(x2, rhs, brow, *, H, W, C, OC, out_dtype):
    """x2: (N, H, W*C);  rhs: (3*W*C, W*OC) column-permuted;  brow: (1, W*OC) f32.
    Returns (N, H, W*OC) = ReLU(conv3x3(x) + b) with columns ordered (i,w,j,c)."""
    N = x2.shape[0]
    WC, K, WOC = W * C, 3 * W * C, W * OC
    assert rhs.shape == (K, WOC) and brow.shape == (1, WOC)
    cdt = x2.dtype

    def kernel(x_ref, rhs_ref, b_ref, o_ref, xpad_ref):
        # Vertical SAME padding: zero only the 2 halo rows (cheap; done every
        # step so it stays correct if the parallel axis is split across cores).
        xpad_ref[0:1, :] = jnp.zeros((1, WC), cdt)
        xpad_ref[H + 1:H + 2, :] = jnp.zeros((1, WC), cdt)
        # Width padding is folded into rhs -> aligned copy at lane offset 0.
        xpad_ref[1:H + 1, :] = x_ref[0]
        # Single MXU matmul, K = 3*W*C: lane-concat the three row-shifted views.
        xcat = jnp.concatenate(
            [xpad_ref[0:H, :], xpad_ref[1:H + 1, :], xpad_ref[2:H + 2, :]], axis=1)
        acc = jnp.dot(xcat, rhs_ref[...], preferred_element_type=jnp.float32)
        acc = acc + b_ref[...]                   # (1, W*OC) f32 broadcast
        o_ref[0] = jnp.maximum(acc, 0.0).astype(o_ref.dtype)

    return pl.pallas_call(
        kernel,
        out_shape=jax.ShapeDtypeStruct((N, H, WOC), out_dtype),
        grid_spec=pltpu.PrefetchScalarGridSpec(
            num_scalar_prefetch=0,
            grid=(N,),
            in_specs=[
                pl.BlockSpec((1, H, WC), lambda n: (n, 0, 0)),
                pl.BlockSpec((K, WOC), lambda n: (0, 0)),    # weights stay resident
                pl.BlockSpec((1, WOC), lambda n: (0, 0)),
            ],
            out_specs=pl.BlockSpec((1, H, WOC), lambda n: (n, 0, 0)),
            scratch_shapes=[pltpu.VMEM((H + 2, WC), cdt)],
        ),
        compiler_params=pltpu.CompilerParams(
            dimension_semantics=("parallel",)),   # batch across TensorCores (v7x)
    )(x2, rhs, brow)


# ---------------------------------------------------------------------------
# Parameters & forward pass
# ---------------------------------------------------------------------------
def init_upsample_params(key, n_channels, scale, dtype=jnp.float32):
    """Mirror the module's __init__ (groups=1). Returns (params, rs), rs static."""
    if scale in (2, 4, 8):
        reps, r = int(math.log2(scale)), 2
    elif scale == 3:
        reps, r = 1, 3
    else:
        reps, r = 0, 1
    params, rs = [], []
    for _ in range(reps):
        key, kw, kb = jax.random.split(key, 3)
        oc = (r * r) * n_channels
        fan_in = n_channels * 9
        bound = 1.0 / math.sqrt(fan_in)
        w = jax.random.uniform(kw, (3, 3, n_channels, oc), dtype,
                               minval=-bound, maxval=bound)      # HWIO
        b = jax.random.uniform(kb, (oc,), dtype, minval=-bound, maxval=bound)
        params.append((w, b))
        rs.append(r)
    return tuple(params), tuple(rs)


def prepare_upsample(params, rs, H, W, compute_dtype=COMPUTE_DTYPE):
    """Host-side, once per weight set / input resolution: build the banded,
    shuffle-permuted weights for every stage.  Returns (prep, meta); meta is a
    static tuple of per-stage (H, W, C, OC, r)."""
    # TODO(synk): grouped convolution (groups > 1) is not implemented; the
    # module's default groups=1 is what this kernel covers.
    prep, meta = [], []
    h, w = H, W
    for (w_hwio, bias), r in zip(params, rs):
        C, OC = int(w_hwio.shape[2]), int(w_hwio.shape[3])
        rhs, brow = _prep_stage_weights(w_hwio, bias, w, r, compute_dtype)
        prep.append((rhs, brow))
        meta.append((h, w, C, OC, r))
        h, w = h * r, w * r
    return tuple(prep), tuple(meta)


@functools.partial(jax.jit, static_argnums=(2,))
def upsample_block(x_nchw, prep, meta):
    """Forward pass of _UpsampleBlock. NCHW in/out like PyTorch.
    prep: tuple of (rhs, brow) per stage (from prepare_upsample);
    meta: STATIC tuple of (H, W, C, OC, r) per stage."""
    # TODO(synk): fusing both stages into a single pallas_call (intermediate in
    # VMEM) would remove one launch + one HBM round trip; kept per-stage here.
    if len(meta) == 0:
        return x_nchw
    N = x_nchw.shape[0]
    x = jnp.transpose(x_nchw, (0, 2, 3, 1))            # NCHW -> NHWC, once
    H0, W0, C0 = x.shape[1], x.shape[2], x.shape[3]
    x2 = x.reshape(N, H0, W0 * C0).astype(COMPUTE_DTYPE)
    n_stages = len(meta)
    for s in range(n_stages):
        rhs, brow = prep[s]
        H, W, C, OC, r = meta[s]
        last = (s == n_stages - 1)
        y2 = _conv3x3_relu_shuffled(
            x2, rhs, brow, H=H, W=W, C=C, OC=OC,
            out_dtype=jnp.float32 if last else COMPUTE_DTYPE)
        C2 = OC // (r * r)
        # PixelShuffle(r): FREE reshape (columns already ordered (i, w, j, c)).
        x2 = y2.reshape(N, H * r, W * r * C2)
    H, W, C, OC, r = meta[-1]
    C2 = OC // (r * r)
    y = x2.reshape(N, H * r, W * r, C2)
    return jnp.transpose(y, (0, 3, 1, 2))              # NHWC -> NCHW, once


# ---------------------------------------------------------------------------
# Pure-JAX references (exact f32 module semantics, and a bf16-matched variant
# that mimics the kernel's compute dtype for a tight numerical check).
# ---------------------------------------------------------------------------
def _reference_forward(x_nchw, params, rs, compute_dtype=None):
    x = x_nchw.astype(jnp.float32)
    n = len(rs)
    for s, ((w_hwio, b), r) in enumerate(zip(params, rs)):
        w_oihw = jnp.transpose(w_hwio, (3, 2, 0, 1)).astype(jnp.float32)
        xin, win = x, w_oihw
        if compute_dtype is not None:
            xin = xin.astype(compute_dtype)
            win = win.astype(compute_dtype)
        y = jax.lax.conv_general_dilated(
            xin, win, window_strides=(1, 1), padding=((1, 1), (1, 1)),
            dimension_numbers=("NCHW", "OIHW", "NCHW"),
            preferred_element_type=jnp.float32)
        y = jnp.maximum(y + b.astype(jnp.float32)[None, :, None, None], 0.0)
        N, OC, H, W = y.shape
        C = OC // (r * r)
        t = y.reshape(N, C, r, r, H, W)
        t = jnp.transpose(t, (0, 1, 4, 2, 5, 3))
        x = t.reshape(N, C, H * r, W * r)
        if compute_dtype is not None and s != n - 1:
            x = x.astype(compute_dtype).astype(jnp.float32)   # mimic bf16 intermediate
    return x


if __name__ == "__main__":
    key = jax.random.PRNGKey(0)
    N, C, H, W = 2, 4, 16, 16
    scale = 4                                  # two (conv -> relu -> shuffle(2)) stages

    kx, kp = jax.random.split(key)
    x = jax.random.normal(kx, (N, C, H, W), jnp.float32)
    params, rs = init_upsample_params(kp, C, scale)

    # Weight folding hoisted out of the jitted forward (runs once).
    prep, meta = prepare_upsample(params, rs, H, W)

    out = jax.block_until_ready(upsample_block(x, prep, meta))

    expected_shape = (N, C, H * scale, W * scale)
    assert out.shape == expected_shape, (out.shape, expected_shape)
    assert out.dtype == jnp.float32

    # (1) Tight check vs a reference that mimics the kernel's bf16 compute:
    #     differences are only f32 accumulation order.
    ref_bf16 = jax.block_until_ready(_reference_forward(x, params, rs, COMPUTE_DTYPE))
    err_bf16 = float(jnp.max(jnp.abs(out - ref_bf16)))
    assert err_bf16 < 5e-3, f"mismatch vs bf16-matched reference: {err_bf16}"

    # (2) Sanity check vs the exact f32 PyTorch-equivalent reference
    #     (relaxed tolerance: bf16 inputs/weights through two conv stages).
    ref_f32 = jax.block_until_ready(_reference_forward(x, params, rs))
    err_f32 = float(jnp.max(jnp.abs(out - ref_f32)))
    scale_ref = float(jnp.max(jnp.abs(ref_f32)))
    assert err_f32 < 5e-2 * scale_ref + 5e-2, f"bf16 drift vs f32 reference: {err_f32}"

    print("KERNEL_OK")
</pallas_src>

<mosaic_0001>
module attributes {stable_mosaic.version = 11 : i64} {
  func.func @kernel(%arg0: i32, %arg1: memref<1x16x64xbf16, #tpu.memory_space<vmem>>, %arg2: memref<192x256xbf16, #tpu.memory_space<vmem>>, %arg3: memref<1x256xf32, #tpu.memory_space<vmem>>, %arg4: memref<1x16x256xbf16, #tpu.memory_space<vmem>>, %arg5: memref<18x64xbf16, #tpu.memory_space<vmem>>) attributes {dimension_semantics = [#tpu.dimension_semantics<parallel>], iteration_bounds = array<i64: 2>, scalar_prefetch = 0 : i64, scratch_operands = 1 : i64, tpu.core_type = #tpu.core_type<tc>, window_params = [{transform_indices = @transform_0, window_bounds = array<i64: 1, 16, 64>}, {pipeline_mode = #tpu.pipeline_mode<synchronous>, transform_indices = @transform_1, window_bounds = array<i64: 192, 256>}, {pipeline_mode = #tpu.pipeline_mode<synchronous>, transform_indices = @transform_2, window_bounds = array<i64: 1, 256>}, {transform_indices = @transform_3, window_bounds = array<i64: 1, 16, 256>}]} {
    %cst = arith.constant 0.000000e+00 : bf16
    %0 = vector.broadcast %cst : bf16 to vector<1x64xbf16>
    %c0 = arith.constant 0 : index
    %c0_0 = arith.constant 0 : index
    %1 = vector.load %arg5[%c0, %c0_0] : memref<18x64xbf16, #tpu.memory_space<vmem>>, vector<1x64xbf16>
    tpu.vector_store %arg5[%c0, %c0_0], %0 {strides = array<i32>} : memref<18x64xbf16, #tpu.memory_space<vmem>>, vector<1x64xbf16>,
    %cst_1 = arith.constant 0.000000e+00 : bf16
    %2 = vector.broadcast %cst_1 : bf16 to vector<1x64xbf16>
    %c17 = arith.constant 17 : index
    %c0_2 = arith.constant 0 : index
    %3 = vector.load %arg5[%c17, %c0_2] : memref<18x64xbf16, #tpu.memory_space<vmem>>, vector<1x64xbf16>
    tpu.vector_store %arg5[%c17, %c0_2], %2 {strides = array<i32>} : memref<18x64xbf16, #tpu.memory_space<vmem>>, vector<1x64xbf16>,
    %c0_3 = arith.constant 0 : index
    %c0_4 = arith.constant 0 : index
    %c0_5 = arith.constant 0 : index
    %4 = vector.load %arg1[%c0_3, %c0_4, %c0_5] : memref<1x16x64xbf16, #tpu.memory_space<vmem>>, vector<1x16x64xbf16>
    %5 = vector.shape_cast %4 : vector<1x16x64xbf16> to vector<16x64xbf16>
    %c1 = arith.constant 1 : index
    %c0_6 = arith.constant 0 : index
    %6 = vector.load %arg5[%c1, %c0_6] : memref<18x64xbf16, #tpu.memory_space<vmem>>, vector<16x64xbf16>
    tpu.vector_store %arg5[%c1, %c0_6], %5 {strides = array<i32>} : memref<18x64xbf16, #tpu.memory_space<vmem>>, vector<16x64xbf16>,
    %c0_7 = arith.constant 0 : index
    %c0_8 = arith.constant 0 : index
    %7 = vector.load %arg5[%c0_7, %c0_8] : memref<18x64xbf16, #tpu.memory_space<vmem>>, vector<16x64xbf16>
    %c1_9 = arith.constant 1 : index
    %c0_10 = arith.constant 0 : index
    %8 = vector.load %arg5[%c1_9, %c0_10] : memref<18x64xbf16, #tpu.memory_space<vmem>>, vector<16x64xbf16>
    %c2 = arith.constant 2 : index
    %c0_11 = arith.constant 0 : index
    %9 = vector.load %arg5[%c2, %c0_11] : memref<18x64xbf16, #tpu.memory_space<vmem>>, vector<16x64xbf16>
    %10 = tpu.concatenate %7, %8, %9 in 1 : vector<16x64xbf16>, vector<16x64xbf16>, vector<16x64xbf16> -> vector<16x192xbf16>
    %c0_12 = arith.constant 0 : index
    %c0_13 = arith.constant 0 : index
    %11 = vector.load %arg2[%c0_12, %c0_13] : memref<192x256xbf16, #tpu.memory_space<vmem>>, vector<192x256xbf16>
    %cst_14 = arith.constant dense<0.000000e+00> : vector<16x256xf32>
    %12 = tpu.matmul %10, %11, %cst_14 {dimension_numbers = #tpu.dot_dimension_numbers<[1], [0], [0], [1], [0, 0, 1, 1], [], []>} : vector<16x192xbf16>, vector<192x256xbf16>, vector<16x256xf32> -> vector<16x256xf32>
    %c0_15 = arith.constant 0 : index
    %c0_16 = arith.constant 0 : index
    %13 = vector.load %arg3[%c0_15, %c0_16] : memref<1x256xf32, #tpu.memory_space<vmem>>, vector<1x256xf32>
    %14 = vector.broadcast %13 : vector<1x256xf32> to vector<16x256xf32>
    %15 = arith.addf %12, %14 : vector<16x256xf32>
    %cst_17 = arith.constant 0.000000e+00 : f32
    %16 = vector.broadcast %cst_17 : f32 to vector<16x256xf32>
    %17 = arith.maximumf %15, %16 : vector<16x256xf32>
    %18 = arith.truncf %17 : vector<16x256xf32> to vector<16x256xbf16>
    %c0_18 = arith.constant 0 : index
    %c0_19 = arith.constant 0 : index
    %c0_20 = arith.constant 0 : index
    %19 = vector.load %arg4[%c0_18, %c0_19, %c0_20] : memref<1x16x256xbf16, #tpu.memory_space<vmem>>, vector<1x16x256xbf16>
    %20 = vector.shape_cast %19 : vector<1x16x256xbf16> to vector<16x256xbf16>
    %21 = vector.shape_cast %18 : vector<16x256xbf16> to vector<1x16x256xbf16>
    tpu.vector_store %arg4[%c0_18, %c0_19, %c0_20], %21 {strides = array<i32>} : memref<1x16x256xbf16, #tpu.memory_space<vmem>>, vector<1x16x256xbf16>,
    return
  }
  func.func @transform_0(%arg0: i32) -> (i32, i32, i32) {
    %c0_i32 = arith.constant 0 : i32
    %c0_i32_0 = arith.constant 0 : i32
    %c0_i32_1 = arith.constant 0 : i32
    return %arg0, %c0_i32, %c0_i32_0 : i32, i32, i32
  }
  func.func @transform_1(%arg0: i32) -> (i32, i32) {
    %c0_i32 = arith.constant 0 : i32
    %c0_i32_0 = arith.constant 0 : i32
    %c0_i32_1 = arith.constant 0 : i32
    return %c0_i32, %c0_i32_0 : i32, i32
  }
  func.func @transform_2(%arg0: i32) -> (i32, i32) {
    %c0_i32 = arith.constant 0 : i32
    %c0_i32_0 = arith.constant 0 : i32
    %c0_i32_1 = arith.constant 0 : i32
    return %c0_i32, %c0_i32_0 : i32, i32
  }
  func.func @transform_3(%arg0: i32) -> (i32, i32, i32) {
    %c0_i32 = arith.constant 0 : i32
    %c0_i32_0 = arith.constant 0 : i32
    %c0_i32_1 = arith.constant 0 : i32
    return %arg0, %c0_i32, %c0_i32_0 : i32, i32, i32
  }
}

module attributes {stable_mosaic.version = 11 : i64} {
  func.func @kernel(%arg0: i32, %arg1: memref<1x32x128xbf16, #tpu.memory_space<vmem>>, %arg2: memref<384x512xbf16, #tpu.memory_space<vmem>>, %arg3: memref<1x512xf32, #tpu.memory_space<vmem>>, %arg4: memref<1x32x512xf32, #tpu.memory_space<vmem>>, %arg5: memref<34x128xbf16, #tpu.memory_space<vmem>>) attributes {dimension_semantics = [#tpu.dimension_semantics<parallel>], iteration_bounds = array<i64: 2>, scalar_prefetch = 0 : i64, scratch_operands = 1 : i64, tpu.core_type = #tpu.core_type<tc>, window_params = [{transform_indices = @transform_0, window_bounds = array<i64: 1, 32, 128>}, {pipeline_mode = #tpu.pipeline_mode<synchronous>, transform_indices = @transform_1, window_bounds = array<i64: 384, 512>}, {pipeline_mode = #tpu.pipeline_mode<synchronous>, transform_indices = @transform_2, window_bounds = array<i64: 1, 512>}, {transform_indices = @transform_3, window_bounds = array<i64: 1, 32, 512>}]} {
    %cst = arith.constant 0.000000e+00 : bf16
    %0 = vector.broadcast %cst : bf16 to vector<1x128xbf16>
    %c0 = arith.constant 0 : index
    %c0_0 = arith.constant 0 : index
    %1 = vector.load %arg5[%c0, %c0_0] : memref<34x128xbf16, #tpu.memory_space<vmem>>, vector<1x128xbf16>
    tpu.vector_store %arg5[%c0, %c0_0], %0 {strides = array<i32>} : memref<34x128xbf16, #tpu.memory_space<vmem>>, vector<1x128xbf16>,
    %cst_1 = arith.constant 0.000000e+00 : bf16
    %2 = vector.broadcast %cst_1 : bf16 to vector<1x128xbf16>
    %c33 = arith.constant 33 : index
    %c0_2 = arith.constant 0 : index
    %3 = vector.load %arg5[%c33, %c0_2] : memref<34x128xbf16, #tpu.memory_space<vmem>>, vector<1x128xbf16>
    tpu.vector_store %arg5[%c33, %c0_2], %2 {strides = array<i32>} : memref<34x128xbf16, #tpu.memory_space<vmem>>, vector<1x128xbf16>,
    %c0_3 = arith.constant 0 : index
    %c0_4 = arith.constant 0 : index
    %c0_5 = arith.constant 0 : index
    %4 = vector.load %arg1[%c0_3, %c0_4, %c0_5] : memref<1x32x128xbf16, #tpu.memory_space<vmem>>, vector<1x32x128xbf16>
    %5 = vector.shape_cast %4 : vector<1x32x128xbf16> to vector<32x128xbf16>
    %c1 = arith.constant 1 : index
    %c0_6 = arith.constant 0 : index
    %6 = vector.load %arg5[%c1, %c0_6] : memref<34x128xbf16, #tpu.memory_space<vmem>>, vector<32x128xbf16>
    tpu.vector_store %arg5[%c1, %c0_6], %5 {strides = array<i32>} : memref<34x128xbf16, #tpu.memory_space<vmem>>, vector<32x128xbf16>,
    %c0_7 = arith.constant 0 : index
    %c0_8 = arith.constant 0 : index
    %7 = vector.load %arg5[%c0_7, %c0_8] : memref<34x128xbf16, #tpu.memory_space<vmem>>, vector<32x128xbf16>
    %c1_9 = arith.constant 1 : index
    %c0_10 = arith.constant 0 : index
    %8 = vector.load %arg5[%c1_9, %c0_10] : memref<34x128xbf16, #tpu.memory_space<vmem>>, vector<32x128xbf16>
    %c2 = arith.constant 2 : index
    %c0_11 = arith.constant 0 : index
    %9 = vector.load %arg5[%c2, %c0_11] : memref<34x128xbf16, #tpu.memory_space<vmem>>, vector<32x128xbf16>
    %10 = tpu.concatenate %7, %8, %9 in 1 : vector<32x128xbf16>, vector<32x128xbf16>, vector<32x128xbf16> -> vector<32x384xbf16>
    %c0_12 = arith.constant 0 : index
    %c0_13 = arith.constant 0 : index
    %11 = vector.load %arg2[%c0_12, %c0_13] : memref<384x512xbf16, #tpu.memory_space<vmem>>, vector<384x512xbf16>
    %cst_14 = arith.constant dense<0.000000e+00> : vector<32x512xf32>
    %12 = tpu.matmul %10, %11, %cst_14 {dimension_numbers = #tpu.dot_dimension_numbers<[1], [0], [0], [1], [0, 0, 1, 1], [], []>} : vector<32x384xbf16>, vector<384x512xbf16>, vector<32x512xf32> -> vector<32x512xf32>
    %c0_15 = arith.constant 0 : index
    %c0_16 = arith.constant 0 : index
    %13 = vector.load %arg3[%c0_15, %c0_16] : memref<1x512xf32, #tpu.memory_space<vmem>>, vector<1x512xf32>
    %14 = vector.broadcast %13 : vector<1x512xf32> to vector<32x512xf32>
    %15 = arith.addf %12, %14 : vector<32x512xf32>
    %cst_17 = arith.constant 0.000000e+00 : f32
    %16 = vector.broadcast %cst_17 : f32 to vector<32x512xf32>
    %17 = arith.maximumf %15, %16 : vector<32x512xf32>
    %c0_18 = arith.constant 0 : index
    %c0_19 = arith.constant 0 : index
    %c0_20 = arith.constant 0 : index
    %18 = vector.load %arg4[%c0_18, %c0_19, %c0_20] : memref<1x32x512xf32, #tpu.memory_space<vmem>>, vector<1x32x512xf32>
    %19 = vector.shape_cast %18 : vector<1x32x512xf32> to vector<32x512xf32>
    %20 = vector.shape_cast %17 : vector<32x512xf32> to vector<1x32x512xf32>
    tpu.vector_store %arg4[%c0_18, %c0_19, %c0_20], %20 {strides = array<i32>} : memref<1x32x512xf32, #tpu.memory_space<vmem>>, vector<1x32x512xf32>,
    return
  }
  func.func @transform_0(%arg0: i32) -> (i32, i32, i32) {
    %c0_i32 = arith.constant 0 : i32
    %c0_i32_0 = arith.constant 0 : i32
    %c0_i32_1 = arith.constant 0 : i32
    return %arg0, %c0_i32, %c0_i32_0 : i32, i32, i32
  }
  func.func @transform_1(%arg0: i32) -> (i32, i32) {
    %c0_i32 = arith.constant 0 : i32
    %c0_i32_0 = arith.constant 0 : i32
    %c0_i32_1 = arith.constant 0 : i32
    return %c0_i32, %c0_i32_0 : i32, i32
  }
  func.func @transform_2(%arg0: i32) -> (i32, i32) {
    %c0_i32 = arith.constant 0 : i32
    %c0_i32_0 = arith.constant 0 : i32
    %c0_i32_1 = arith.constant 0 : i32
    return %c0_i32, %c0_i32_0 : i32, i32
  }
  func.func @transform_3(%arg0: i32) -> (i32, i32, i32) {
    %c0_i32 = arith.constant 0 : i32
    %c0_i32_0 = arith.constant 0 : i32
    %c0_i32_1 = arith.constant 0 : i32
    return %arg0, %c0_i32, %c0_i32_0 : i32, i32, i32
  }
}

</mosaic_0001>

<bundles_post_ra>
// kernel: upsample_block.2
= control target key start
LH: loop header
LB: loop body
LE: loop exit
PB: predicated region body
PF: predicated region fallthrough
CT: control target
= control target key end

     0   :  { %8 = vsyncpa [#allocation4], 0  ;;  %s911_s0 = inlined_call_operand.vmem [shape: bf16[2,16,64], index: 0, kind: input, shape index: {}]   ;;  %s912_s1 = inlined_call_operand.hbm [shape: bf16[192,256], index: 1, kind: input, shape index: {}]   ;;  %s913_s2 = inlined_call_operand.hbm [shape: f32[1,256], index: 2, kind: input, shape index: {}]   ;;  %s914_s3 = inlined_call_operand.vmem [shape: bf16[2,16,256], index: 3, kind: output, shape index: {}]  }
   0x1   :  { %9 = vsyncpa [#allocation6], 0  ;;  %s797_s12 = smov 0  }
   0x2 LB: > { %s803_s13 = sadd.s32 4294967295, %s770_s12   ;;  %p582_p0 = scmp.ge.s32.totalorder %s770_s12, 1  ;;  %s770_s12 = sphi %s797_s12, %s15_s12  }
   0x3   : > { %p114_p1 = scmp.lt.s32.totalorder %s770_s12, 3  ;;  %s772_s14 = smov [#allocation3]  }
   0x4   : > { %s126_s15 = sshll.u32 %s772_s14, 4  ;;  %p915_p3 = scmp.eq.s32.totalorder %s803_s13, 0  ;;  %s127_s15 = int_to_ptr.vmem [resolvable:$true] %s126_s15 }
   0x5   : > { %p807_p2 = pnand %p582_p0, %p114_p1  ;;  %s773_s17 = smov [#allocation5]  }
   0x6   : > { %s140_s18 = sshll.u32 %s773_s17, 4  ;;  %s700_s22 = scalar_lea.hbm %s912_s1, 3072  ;;  %s820_s18 = int_to_ptr.vmem [resolvable:$true] %s140_s18 }
   0x7   : > { %s917_s16 = scalar_select %p807_p2, 1, 0 }
   0x8   : > { %p637_p4 = pneg %p807_p2  ;;  %p701_p6 = scmp.ne.s32.totalorder %s912_s1, %s700_s22 }
   0x9   : > { %p707_p10 = scmp.lt.u32.totalorder %s700_s22, %s912_s1 }
   0xa   : > { %p816_p5 = pnand %p915_p3, %p637_p4 }
   0xc   : > { %p702_p7 = pneg %p816_p5 }
   0xe   : > { %p703_p8 = pnand %p702_p7, %p701_p6 }
  0x10   : > { %p704_p9 = pneg %p703_p8 }
  0x12   : > { %p709_p11 = pnand %p707_p10, %p704_p9 }
  0x14   : > { %712 = shalt.err (!%p709_p11)
}
  0x15   : > { %s713_s27 = scalar_lea.vmem %s127_s15, 3072  ;;  %p721_p1 = scmp.lt.s32.totalorder %s127_s15, %s127_s15 }
  0x16   : > { %p714_p12 = scmp.ne.s32.totalorder %s127_s15, %s713_s27  ;;  %p722_p4 = scmp.lt.s32.totalorder %s713_s27, %s713_s27 }
  0x18   : > { %p716_p13 = pnand %p714_p12, %p702_p7  ;;  %p723_p3 = por %p722_p4, %p721_p1 }
  0x1a   : > { %p717_p0 = pneg %p716_p13 }
  0x1c   : > { %p724_p2 = pnand %p723_p3, %p717_p0 }
  0x1e   : > { %727 = shalt.err (!%p724_p2)
}
  0x1f   : > { %s774_s28 = smov 128   ;;  %s775_s29 = smov 8  }
  0x20   : > { %640 = dma.hbm_to_vmem [thread:$0]  (!%p816_p5), %s912_s1, 3072, %s127_s15, [#allocation4], %s774_s28, %s774_s28, %s775_s29  }
  0x21   : > { %s728_s7 = scalar_lea.hbm %s913_s2, 32 }
  0x22   : > { %p729_p6 = scmp.ne.s32.totalorder %s913_s2, %s728_s7  ;;  %p735_p8 = scmp.lt.u32.totalorder %s728_s7, %s913_s2 }
  0x24   : > { %p731_p2 = pnand %p729_p6, %p702_p7 }
  0x26   : > { %p732_p3 = pneg %p731_p2 }
  0x28   : > { %p737_p9 = pnand %p735_p8, %p732_p3 }
  0x2a   : > { %740 = shalt.err (!%p737_p9)
}
  0x2b   : > { %s741_s14 = scalar_lea.vmem %s820_s18, 32  ;;  %p749_p13 = scmp.lt.s32.totalorder %s820_s18, %s820_s18 }
  0x2c   : > { %p742_p10 = scmp.ne.s32.totalorder %s820_s18, %s741_s14  ;;  %p750_p0 = scmp.lt.s32.totalorder %s741_s14, %s741_s14 }
  0x2e   : > { %p744_p11 = pnand %p742_p10, %p702_p7  ;;  %p751_p1 = por %p750_p0, %p749_p13 }
  0x30   : > { %p745_p12 = pneg %p744_p11 }
  0x32   : > { %p752_p4 = pnand %p751_p1, %p745_p12 }
  0x34   : > { %755 = shalt.err (!%p752_p4)
}
  0x35   : > { %643 = dma.hbm_to_vmem [thread:$0]  (!%p816_p5), %s913_s2, 32, %s820_s18, [#allocation6]  }
  0x36   : > { %p919_p6 = scmp.ne.s32.totalorder %s917_s16, 0 }
  0x37   : > { %p920_p2 = scmp.eq.s32.totalorder (!%p919_p6), %s803_s13, 0 }
  0x38   : > { %161 = sbr.rel (%p919_p6) target bundleno = 435 (0x1b3), region = 32 }
  0x3f   : > { %761 = dma.done.wait (%p920_p2), [#allocation4], 3072   ;;  %p921_p7 = pmov %p920_p2 }
  0x40   : > { %p922_p3 = pmov %p920_p2 }
  0x41   : > { %763 = vsyncadd (%p921_p7), [#allocation4], 4294964224 }
  0x42   : > { %765 = dma.done.wait (%p922_p3), [#allocation6], 32   ;;  %p923_p8 = pmov %p920_p2 }
  0x43   : > { %p189_p9 = scmp.lt.s32.totalorder %s803_s13, 1  ;;  %vm200_vm0 = vcmask 516096   ;;  %vm201_vm1 = vsmask.f32 256  ;;  %vm206_vm2 = vsmask.f32 7938  ;;  %v309_v0 = vlaneseq }
  0x44   : > { %767 = vsyncadd (%p923_p8), [#allocation6], 4294967264  ;;  %vm213_vm5 = vsmask.f32 4368  ;;  %v203_v1 = vld [vmem:[#allocation2] sm:$0x1] }
  0x45   : > { %s927_s13 = smov (!%p189_p9, %s803_s13), 1  ;;  %vm885_vm3 = vmand %vm200_vm0, %vm201_vm1  ;;  %v208_v2 = vld [vmem:[#allocation2 + $0x8] sm:$0x1]  ;;  %v663_v11 = vld [vmem:[#allocation3 + $0x4] ss:$8 sps:$4 sm:$0xff]   ;;  %vm235_vm6 = vcmask 519168  }
  0x46   : > { %s625_s16 = sshll.u32 %s927_s13, 3  ;;  %vm207_vm4 = vmand %vm200_vm0, %vm206_vm2  ;;  %v204_v4 = vsel %vm885_vm3, 0, %v203_v1  ;;  %v665_v13 = vld [vmem:[#allocation3] ss:$8 sps:$4 sm:$0xff]   ;;  %442 = vmatprep.subr.bf16.mxu0 %v663_v11  ;;  %v666_v15 = vld [vmem:[#allocation3 + $0x14] ss:$8 sps:$4 sm:$0xff]  }
  0x47   : > { %s193_s20 = scalar_lea.vmem %s911_s0, %s625_s16  ;;  %v209_v5 = vsel %vm207_vm4, 0, %v208_v2  ;;  %205 = vst [vmem:[#allocation2] sm:$0x1] %v204_v4  ;;  %vm214_vm7 = vmor %vm201_vm1, %vm213_vm5  ;;  %443 = vmatpush1.bf16.msra.mxu0 %v665_v13  ;;  %v668_v17 = vld [vmem:[#allocation3 + $0x10] ss:$8 sps:$4 sm:$0xff]   ;;  %vm275_vm9 = vcmask 1046528  }
  0x48   : > { %v211_v3 = vld [vmem:[%s193_s20] sm:$0xf]  ;;  %v212_v6 = vld [vmem:[%s193_s20 + $0x4] sm:$0xf]  ;;  %210 = vst [vmem:[#allocation2 + $0x8] sm:$0x1] %v209_v5  ;;  %444 = vmatprep.subr.bf16.mxu0 %v666_v15  ;;  %vm236_vm8 = vmand %vm235_vm6, %vm206_vm2 }
  0x49   : > { %v216_v7 = vshrl.u32 %v211_v3, 16  ;;  %v219_v8 = vshll.u32 %v211_v3, 16  ;;  %v224_v9 = vshrl.u32 %v212_v6, 16  ;;  %v227_v10 = vshll.u32 %v212_v6, 16  ;;  %v669_v21 = vld [vmem:[#allocation3 + $0x24] ss:$8 sps:$4 sm:$0xff]  }
  0x4a   : > { %v671_v23 = vld [vmem:[#allocation3 + $0x20] ss:$8 sps:$4 sm:$0xff]   ;;  %v672_v28 = vld [vmem:[#allocation3 + $0x34] ss:$8 sps:$4 sm:$0xff]   ;;  %v674_v29 = vld [vmem:[#allocation3 + $0x30] ss:$8 sps:$4 sm:$0xff]  }
  0x4b   : > { %v218_v12 = vrot.slane %v216_v7, 7  ;;  %v226_v14 = vrot.slane %v224_v9, 7  ;;  %445 = vmatpush1.bf16.msra.mxu0 %v668_v17  ;;  %v675_v30 = vld [vmem:[#allocation3 + $0x44] ss:$8 sps:$4 sm:$0xff]   ;;  %v677_v32 = vld [vmem:[#allocation3 + $0x40] ss:$8 sps:$4 sm:$0xff]  }
  0x4c   : > { %446 = vmatprep.subr.bf16.mxu0 %v669_v21  ;;  %v678_v33 = vld [vmem:[#allocation3 + $0x54] ss:$8 sps:$4 sm:$0xff]   ;;  %v680_v41 = vld [vmem:[#allocation3 + $0x50] ss:$8 sps:$4 sm:$0xff]   ;;  %v681_v43 = vld [vmem:[#allocation3 + $0x64] ss:$8 sps:$4 sm:$0xff]  }
  0x4d   : > { %v222_v16 = vrot.slane %v218_v12, 4  ;;  %v221_v18 = vor.u32 %v219_v8, %v218_v12  ;;  %v229_v19 = vor.u32 %v227_v10, %v226_v14  ;;  %v231_v20 = vrot.slane %v226_v14, 4  ;;  %v683_v49 = vld [vmem:[#allocation3 + $0x60] ss:$8 sps:$4 sm:$0xff]   ;;  %v684_v51 = vld [vmem:[#allocation3 + $0x74] ss:$8 sps:$4 sm:$0xff]  }
  0x4e   : > { %v237_v24 = vld [vmem:[#allocation2] sm:$0xf]  ;;  %vm279_vm10 = vcmask 523264   ;;  %vm257_vm11 = vsmask.f32 7424  ;;  %s776_s21 = smov 64  }
  0x4f   : > { %v230_v22 = vsel %vm214_vm7, %v222_v16, %v229_v19  ;;  %v242_v25 = vld [vmem:[#allocation2 + $0x8] sm:$0x1]  ;;  %v238_v26 = vsel %vm236_vm8, %v221_v18, %v237_v24  ;;  %447 = vmatpush1.bf16.msra.mxu0 %v671_v23  ;;  %v686_v53 = vld [vmem:[#allocation3 + $0x70] ss:$8 sps:$4 sm:$0xff]   ;;  %v687_v54 = vld [vmem:[#allocation3 + $0x84] ss:$8 sps:$4 sm:$0xff]  }
  0x50   : > { %241 = vst.msk [vmem:[#allocation2 + $0x4] sm:$0xf] %vm235_vm6, %v230_v22  ;;  %v243_v27 = vsel %vm885_vm3, %v231_v20, %v242_v25  ;;  %239 = vst [vmem:[#allocation2] sm:$0xf] %v238_v26  ;;  %448 = vmatprep.subr.bf16.mxu0 %v672_v28  ;;  %v689_v55 = vld [vmem:[#allocation3 + $0x80] ss:$8 sps:$4 sm:$0xff]  }
  0x51   : > { %244 = vst [vmem:[#allocation2 + $0x8] sm:$0x1] %v243_v27  ;;  %v690_v56 = vld [vmem:[#allocation3 + $0x94] ss:$8 sps:$4 sm:$0xff]   ;;  %v692_v57 = vld [vmem:[#allocation3 + $0x90] ss:$8 sps:$4 sm:$0xff]  }
  0x52   : > { %v693_v58 = vld [vmem:[#allocation3 + $0xa4] ss:$8 sps:$4 sm:$0xff]   ;;  %v695_v59 = vld [vmem:[#allocation3 + $0xa0] ss:$8 sps:$4 sm:$0xff]   ;;  %v696_v60 = vld [vmem:[#allocation3 + $0xb4] ss:$8 sps:$4 sm:$0xff]  }
  0x53   : > { %449 = vmatpush1.bf16.msra.mxu0 %v674_v29  ;;  %v698_v61 = vld [vmem:[#allocation3 + $0xb0] ss:$8 sps:$4 sm:$0xff]   ;;  %v310_v1 = vshrl.u32 %v309_v0, 7  ;;  %v307_v3 = vld [vmem:[#allocation5] sm:$0x3]  ;;  %s626_s22 = sshll.u32 %s927_s13, 4 }
  0x54   : > { %450 = vmatprep.subr.bf16.mxu0 %v675_v30  ;;  %s198_s25 = scalar_lea.vmem %s914_s3, %s626_s22 }
  0x55   : > { %v311_v2 = vsub.s32 0, %v310_v1  ;;  %v315_v4 = vsub.s32 1, %v310_v1 }
  0x57   : > { %v246_v31 = vld [vmem:[#allocation2 + $0x4] sm:$0xf]  ;;  %v245_v34 = vld [vmem:[#allocation2] sm:$0xf]  ;;  %451 = vmatpush1.bf16.msra.mxu0 %v677_v32  ;;  %v312_v5 = vrot.slane %v307_v3, %v311_v2  ;;  %v316_v6 = vrot.slane %v307_v3, %v315_v4 }
  0x58   : > { %v593_v35 = vcombine.low %v245_v34, %v246_v31  ;;  %v662_v36 = vld [vmem:[#allocation2 + $0x8] ss:$0 sps:$4 sm:$0x11]   ;;  %v248_v37 = vld [vmem:[#allocation2] sm:$0xe]  ;;  %452 = vmatprep.subr.bf16.mxu0 %v678_v33 }
  0x59   : > { %v266_v40 = vshll.u32 %v662_v36, 16  ;;  %v595_v42 = vcombine.low %v248_v37, %v246_v31  ;;  %v277_v44 = vrot.slane %v662_v36, 1 }
  0x5a   : > { %v259_v38 = vshrl.u32 %v593_v35, 16  ;;  %v261_v39 = vshll.u32 %v593_v35, 16 }
  0x5b   : > { %v268_v46 = vrot.slane %v266_v40, 1  ;;  %v276_v47 = vrot.slane %v595_v42, 1  ;;  %453 = vmatpush1.bf16.msra.mxu0 %v680_v41 }
  0x5c   : > { %v263_v45 = vrot.slane %v261_v39, 1  ;;  %454 = vmatprep.subr.bf16.mxu0 %v681_v43 }
  0x5d   : > { %v278_v50 = vsel %vm275_vm9, %v276_v47, %v277_v44 }
  0x5e   : > { %v264_v48 = vor.u32 %v263_v45, %v259_v38  ;;  %620 = vmatprep.mubr.msk.bf16.mxu0 %vm279_vm10, %v278_v50 }
  0x5f   : > { %455 = vmatpush1.bf16.msra.mxu0 %v683_v49 }
  0x60   : > { %v269_v52 = vsel %vm257_vm11, %v264_v48, %v268_v46  ;;  %456 = vmatprep.subr.bf16.mxu0 %v684_v51 }
  0x61   : > { %270 = vrot.lane.b32.xlu0 %v269_v52, %s776_s21 }
  0x63   : > { %457 = vmatpush1.bf16.msra.mxu0 %v686_v53 }
  0x64   : > { %458 = vmatprep.subr.bf16.mxu0 %v687_v54 }
  0x67   : > { %459 = vmatpush1.bf16.msra.mxu0 %v689_v55 }
  0x68   : > { %460 = vmatprep.subr.bf16.mxu0 %v690_v56 }
  0x6b   : > { %461 = vmatpush1.bf16.msra.mxu0 %v692_v57 }
  0x6c   : > { %462 = vmatprep.subr.bf16.mxu0 %v693_v58 }
  0x6f   : > { %463 = vmatpush1.bf16.msra.mxu0 %v695_v59 }
  0x70   : > { %464 = vmatprep.subr.bf16.mxu0 %v696_v60 }
  0x73   : > { %465 = vmatpush1.bf16.msra.mxu0 %v698_v61 }
  0xd3   : > { %v271_v62 = vpop.permute.xlu0 %270 }
  0xd4   : > { %v281_v63 = vsel %vm279_vm10, %v593_v35, %v271_v62 }
  0xd5   : > { %475 = vmatmul.mubr.bf16.vlgmr.msra.gmra.mrb[0].mxu0 %v281_v63 }
 0x1a8   : > { %v476_v7 = vpop.f32.mrb[0].mxu0 }
 0x1a9   : > { %v477_v8 = vadd.f32 %v476_v7, %v312_v5  ;;  %v478_v9 = vpop.f32.mrb[1].mxu0 }
 0x1aa   : > { %v479_v10 = vadd.f32 %v478_v9, %v316_v6  ;;  %v480_v11 = vpop.f32.mrb[2].mxu0 }
 0x1ab   : > { %v485_v12 = vmax.f32 %v477_v8, 0.0  ;;  %v481_v13 = vadd.f32 %v480_v11, %v312_v5  ;;  %v482_v14 = vpop.f32.mrb[3].mxu0 }
 0x1ac   : > { %v486_v15 = vmax.f32 %v479_v10, 0.0  ;;  %v483_v16 = vadd.f32 %v482_v14, %v316_v6 }
 0x1ad   : > { %v487_v17 = vmax.f32 %v481_v13, 0.0 }
 0x1ae   : > { %v627_v18 = vpack.c.bf16 %v486_v15, %v485_v12  ;;  %v488_v19 = vmax.f32 %v483_v16, 0.0 }
 0x1b0   : > { %501 = vst [vmem:[%s198_s25] sm:$0xff] %v627_v18  ;;  %v628_v20 = vpack.c.bf16 %v488_v19, %v487_v17 }
 0x1b2   : > { %502 = vst [vmem:[%s198_s25 + $0x8] sm:$0xff] %v628_v20 }
 0x1b3 PF: > { %s15_s12 = sadd.s32 1, %s770_s12  }
 0x1b4   : > { %p12_p5 = scmp.ge.s32.totalorder %s15_s12, 4  }
 0x1b6   :  { %14 = sbr.rel (!%p12_p5) target bundleno = 2 (0x2), region = 71 }
 0x1bd   :  { %524 = vsyncpa [#allocation4], 1 }
 0x1be   :  { %526 = vsyncpa [#allocation4 + $0x1], 1 }
 0x1bf   :  { %527 = vsyncpa [#allocation6], 1 }

// kernel: upsample_block.3
= control target key start
LH: loop header
LB: loop body
LE: loop exit
PB: predicated region body
PF: predicated region fallthrough
CT: control target
= control target key end

     0   :  { %8 = vsyncpa [#allocation4], 0  ;;  %s1832_s0 = inlined_call_operand.vmem [shape: bf16[2,32,128], index: 0, kind: input, shape index: {}]   ;;  %s1833_s1 = inlined_call_operand.hbm [shape: bf16[384,512], index: 1, kind: input, shape index: {}]   ;;  %s1834_s2 = inlined_call_operand.hbm [shape: f32[1,512], index: 2, kind: input, shape index: {}]   ;;  %s1835_s3 = inlined_call_operand.vmem [shape: f32[2,32,512], index: 3, kind: output, shape index: {}]  }
   0x1   :  { %9 = vsyncpa [#allocation6], 0  ;;  %s1668_s12 = smov 0  }
   0x2 LB: > { %s1674_s13 = sadd.s32 4294967295, %s1641_s12   ;;  %p1244_p0 = scmp.ge.s32.totalorder %s1641_s12, 1  ;;  %s1641_s12 = sphi %s1668_s12, %s15_s12  }
   0x3   : > { %p114_p1 = scmp.lt.s32.totalorder %s1641_s12, 3  ;;  %s1643_s14 = smov [#allocation3]  }
   0x4   : > { %s126_s15 = sshll.u32 %s1643_s14, 4  ;;  %p1836_p3 = scmp.eq.s32.totalorder %s1674_s13, 0  ;;  %s127_s15 = int_to_ptr.vmem [resolvable:$true] %s126_s15 }
   0x5   : > { %p1678_p2 = pnand %p1244_p0, %p114_p1  ;;  %s1644_s17 = smov [#allocation5]  }
   0x6   : > { %s140_s18 = sshll.u32 %s1644_s17, 4  ;;  %s1571_s22 = scalar_lea.hbm %s1833_s1, 12288  ;;  %s1691_s18 = int_to_ptr.vmem [resolvable:$true] %s140_s18 }
   0x7   : > { %s1838_s16 = scalar_select %p1678_p2, 1, 0 }
   0x8   : > { %p1399_p4 = pneg %p1678_p2  ;;  %p1572_p6 = scmp.ne.s32.totalorder %s1833_s1, %s1571_s22 }
   0x9   : > { %p1578_p10 = scmp.lt.u32.totalorder %s1571_s22, %s1833_s1 }
   0xa   : > { %p1687_p5 = pnand %p1836_p3, %p1399_p4 }
   0xc   : > { %p1573_p7 = pneg %p1687_p5 }
   0xe   : > { %p1574_p8 = pnand %p1573_p7, %p1572_p6 }
  0x10   : > { %p1575_p9 = pneg %p1574_p8 }
  0x12   : > { %p1580_p11 = pnand %p1578_p10, %p1575_p9 }
  0x14   : > { %1583 = shalt.err (!%p1580_p11)
}
  0x15   : > { %s1584_s27 = scalar_lea.vmem %s127_s15, 12288  ;;  %p1592_p1 = scmp.lt.s32.totalorder %s127_s15, %s127_s15 }
  0x16   : > { %p1585_p12 = scmp.ne.s32.totalorder %s127_s15, %s1584_s27  ;;  %p1593_p4 = scmp.lt.s32.totalorder %s1584_s27, %s1584_s27 }
  0x18   : > { %p1587_p13 = pnand %p1585_p12, %p1573_p7  ;;  %p1594_p3 = por %p1593_p4, %p1592_p1 }
  0x1a   : > { %p1588_p0 = pneg %p1587_p13 }
  0x1c   : > { %p1595_p2 = pnand %p1594_p3, %p1588_p0 }
  0x1e   : > { %1598 = shalt.err (!%p1595_p2)
}
  0x1f   : > { %s1645_s28 = smov 256   ;;  %s1646_s29 = smov 16  }
  0x20   : > { %1402 = dma.hbm_to_vmem [thread:$0]  (!%p1687_p5), %s1833_s1, 12288, %s127_s15, [#allocation4], %s1645_s28, %s1645_s28, %s1646_s29  }
  0x21   : > { %s1599_s7 = scalar_lea.hbm %s1834_s2, 64 }
  0x22   : > { %p1600_p6 = scmp.ne.s32.totalorder %s1834_s2, %s1599_s7  ;;  %p1606_p8 = scmp.lt.u32.totalorder %s1599_s7, %s1834_s2 }
  0x24   : > { %p1602_p2 = pnand %p1600_p6, %p1573_p7 }
  0x26   : > { %p1603_p3 = pneg %p1602_p2 }
  0x28   : > { %p1608_p9 = pnand %p1606_p8, %p1603_p3 }
  0x2a   : > { %1611 = shalt.err (!%p1608_p9)
}
  0x2b   : > { %s1612_s14 = scalar_lea.vmem %s1691_s18, 64  ;;  %p1620_p13 = scmp.lt.s32.totalorder %s1691_s18, %s1691_s18 }
  0x2c   : > { %p1613_p10 = scmp.ne.s32.totalorder %s1691_s18, %s1612_s14  ;;  %p1621_p0 = scmp.lt.s32.totalorder %s1612_s14, %s1612_s14 }
  0x2e   : > { %p1615_p11 = pnand %p1613_p10, %p1573_p7  ;;  %p1622_p1 = por %p1621_p0, %p1620_p13 }
  0x30   : > { %p1616_p12 = pneg %p1615_p11 }
  0x32   : > { %p1623_p4 = pnand %p1622_p1, %p1616_p12 }
  0x34   : > { %1626 = shalt.err (!%p1623_p4)
}
  0x35   : > { %1405 = dma.hbm_to_vmem [thread:$0]  (!%p1687_p5), %s1834_s2, 64, %s1691_s18, [#allocation6]  }
  0x36   : > { %p1840_p6 = scmp.ne.s32.totalorder %s1838_s16, 0 }
  0x37   : > { %p1841_p2 = scmp.eq.s32.totalorder (!%p1840_p6), %s1674_s13, 0 }
  0x38   : > { %161 = sbr.rel (%p1840_p6) target bundleno = 392 (0x188), region = 32 }
  0x3f   : > { %1632 = dma.done.wait (%p1841_p2), [#allocation4], 12288   ;;  %p1842_p7 = pmov %p1841_p2 }
  0x40   : > { %p1843_p3 = pmov %p1841_p2 }
  0x41   : > { %1634 = vsyncadd (%p1842_p7), [#allocation4], 4294955008 }
  0x42   : > { %1636 = dma.done.wait (%p1843_p3), [#allocation6], 64   ;;  %p1844_p8 = pmov %p1841_p2 }
  0x43   : > { %v1423_v0 = vld [vmem:[#allocation3 + $0x4] ss:$16 sps:$4 sm:$0xff]   ;;  %v1425_v1 = vld [vmem:[#allocation3 + $0xc] ss:$16 sps:$4 sm:$0xff]   ;;  %v1427_v2 = vld [vmem:[#allocation3] ss:$16 sps:$4 sm:$0xff]  }
  0x44   : > { %1638 = vsyncadd (%p1844_p8), [#allocation6], 4294967232  ;;  %921 = vmatprep.subr.bf16.mxu0 %v1423_v0  ;;  %v1428_v3 = vld [vmem:[#allocation3 + $0x8] ss:$16 sps:$4 sm:$0xff]   ;;  %1027 = vmatprep.subr.bf16.mxu1 %v1425_v1  ;;  %v1429_v4 = vld [vmem:[#allocation3 + $0x24] ss:$16 sps:$4 sm:$0xff]  }
  0x45   : > { %922 = vmatpush1.bf16.msra.mxu0 %v1427_v2  ;;  %1028 = vmatpush1.bf16.msra.mxu1 %v1428_v3  ;;  %v1431_v5 = vld [vmem:[#allocation3 + $0x2c] ss:$16 sps:$4 sm:$0xff]   ;;  %v1433_v6 = vld [vmem:[#allocation3 + $0x20] ss:$16 sps:$4 sm:$0xff]   ;;  %v1434_v7 = vld [vmem:[#allocation3 + $0x28] ss:$16 sps:$4 sm:$0xff]  }
  0x46   : > { %923 = vmatprep.subr.bf16.mxu0 %v1429_v4  ;;  %1029 = vmatprep.subr.bf16.mxu1 %v1431_v5  ;;  %v1435_v8 = vld [vmem:[#allocation3 + $0x44] ss:$16 sps:$4 sm:$0xff]   ;;  %v1437_v9 = vld [vmem:[#allocation3 + $0x4c] ss:$16 sps:$4 sm:$0xff]   ;;  %v1439_v10 = vld [vmem:[#allocation3 + $0x40] ss:$16 sps:$4 sm:$0xff]  }
  0x47   : > { %v1440_v11 = vld [vmem:[#allocation3 + $0x48] ss:$16 sps:$4 sm:$0xff]   ;;  %v1441_v12 = vld [vmem:[#allocation3 + $0x64] ss:$16 sps:$4 sm:$0xff]   ;;  %v1443_v13 = vld [vmem:[#allocation3 + $0x6c] ss:$16 sps:$4 sm:$0xff]  }
  0x48   : > { %v1445_v14 = vld [vmem:[#allocation3 + $0x60] ss:$16 sps:$4 sm:$0xff]   ;;  %v1446_v15 = vld [vmem:[#allocation3 + $0x68] ss:$16 sps:$4 sm:$0xff]   ;;  %v1447_v16 = vld [vmem:[#allocation3 + $0x84] ss:$16 sps:$4 sm:$0xff]  }
  0x49   : > { %924 = vmatpush1.bf16.msra.mxu0 %v1433_v6  ;;  %1030 = vmatpush1.bf16.msra.mxu1 %v1434_v7  ;;  %v1449_v17 = vld [vmem:[#allocation3 + $0x8c] ss:$16 sps:$4 sm:$0xff]   ;;  %v1451_v18 = vld [vmem:[#allocation3 + $0x80] ss:$16 sps:$4 sm:$0xff]   ;;  %v1452_v19 = vld [vmem:[#allocation3 + $0x88] ss:$16 sps:$4 sm:$0xff]  }
  0x4a   : > { %925 = vmatprep.subr.bf16.mxu0 %v1435_v8  ;;  %1031 = vmatprep.subr.bf16.mxu1 %v1437_v9  ;;  %v1453_v20 = vld [vmem:[#allocation3 + $0xa4] ss:$16 sps:$4 sm:$0xff]   ;;  %v1455_v21 = vld [vmem:[#allocation3 + $0xac] ss:$16 sps:$4 sm:$0xff]   ;;  %v1457_v22 = vld [vmem:[#allocation3 + $0xa0] ss:$16 sps:$4 sm:$0xff]  }
  0x4b   : > { %v1458_v23 = vld [vmem:[#allocation3 + $0xa8] ss:$16 sps:$4 sm:$0xff]   ;;  %v1459_v24 = vld [vmem:[#allocation3 + $0xc4] ss:$16 sps:$4 sm:$0xff]   ;;  %v1461_v25 = vld [vmem:[#allocation3 + $0xcc] ss:$16 sps:$4 sm:$0xff]  }
  0x4c   : > { %v1463_v26 = vld [vmem:[#allocation3 + $0xc0] ss:$16 sps:$4 sm:$0xff]   ;;  %v1464_v27 = vld [vmem:[#allocation3 + $0xc8] ss:$16 sps:$4 sm:$0xff]   ;;  %v1465_v28 = vld [vmem:[#allocation3 + $0xe4] ss:$16 sps:$4 sm:$0xff]  }
  0x4d   : > { %926 = vmatpush1.bf16.msra.mxu0 %v1439_v10  ;;  %1032 = vmatpush1.bf16.msra.mxu1 %v1440_v11  ;;  %v1467_v29 = vld [vmem:[#allocation3 + $0xec] ss:$16 sps:$4 sm:$0xff]   ;;  %v1469_v30 = vld [vmem:[#allocation3 + $0xe0] ss:$16 sps:$4 sm:$0xff]   ;;  %v1470_v31 = vld [vmem:[#allocation3 + $0xe8] ss:$16 sps:$4 sm:$0xff]  }
  0x4e   : > { %927 = vmatprep.subr.bf16.mxu0 %v1441_v12  ;;  %1033 = vmatprep.subr.bf16.mxu1 %v1443_v13  ;;  %v1471_v32 = vld [vmem:[#allocation3 + $0x104] ss:$16 sps:$4 sm:$0xff]   ;;  %v1473_v33 = vld [vmem:[#allocation3 + $0x10c] ss:$16 sps:$4 sm:$0xff]   ;;  %p189_p5 = scmp.lt.s32.totalorder %s1674_s13, 1  ;;  %vm200_vm1 = vcmask 1040384  }
  0x4f   : > { %v1475_v34 = vld [vmem:[#allocation3 + $0x100] ss:$16 sps:$4 sm:$0xff]   ;;  %v1476_v35 = vld [vmem:[#allocation3 + $0x108] ss:$16 sps:$4 sm:$0xff]   ;;  %v1477_v36 = vld [vmem:[#allocation3 + $0x124] ss:$16 sps:$4 sm:$0xff]  }
  0x50   : > { %v1479_v37 = vld [vmem:[#allocation3 + $0x12c] ss:$16 sps:$4 sm:$0xff]   ;;  %s1852_s13 = smov (!%p189_p5, %s1674_s13), 1  ;;  %v1481_v38 = vld [vmem:[#allocation3 + $0x120] ss:$16 sps:$4 sm:$0xff]   ;;  %vm257_vm5 = vcmask 1043456  }
  0x51   : > { %928 = vmatpush1.bf16.msra.mxu0 %v1445_v14  ;;  %1034 = vmatpush1.bf16.msra.mxu1 %v1446_v15  ;;  %vm201_vm0 = vsmask.f32 256  ;;  %v1482_v39 = vld [vmem:[#allocation3 + $0x128] ss:$16 sps:$4 sm:$0xff]   ;;  %v1483_v40 = vld [vmem:[#allocation3 + $0x144] ss:$16 sps:$4 sm:$0xff]  }
  0x52   : > { %929 = vmatprep.subr.bf16.mxu0 %v1447_v16  ;;  %1035 = vmatprep.subr.bf16.mxu1 %v1449_v17  ;;  %v1485_v41 = vld [vmem:[#allocation3 + $0x14c] ss:$16 sps:$4 sm:$0xff]   ;;  %s1357_s16 = sshll.u32 %s1852_s13, 4  ;;  %v1487_v42 = vld [vmem:[#allocation3 + $0x140] ss:$16 sps:$4 sm:$0xff]   ;;  %vm1757_vm2 = vmand %vm200_vm1, %vm201_vm0  ;;  %vm315_vm10 = vcmask 1046528  }
  0x53   : > { %v1488_v43 = vld [vmem:[#allocation3 + $0x148] ss:$16 sps:$4 sm:$0xff]   ;;  %v1489_v45 = vld [vmem:[#allocation3 + $0x164] ss:$16 sps:$4 sm:$0xff]   ;;  %s193_s20 = scalar_lea.vmem %s1832_s0, %s1357_s16  ;;  %vm206_vm3 = vsmask.f32 7938 }
  0x54   : > { %v1491_v46 = vld [vmem:[#allocation3 + $0x16c] ss:$16 sps:$4 sm:$0xff]   ;;  %vm215_vm4 = vsmask.f32 4368  ;;  %v1493_v47 = vld [vmem:[#allocation3 + $0x160] ss:$16 sps:$4 sm:$0xff]   ;;  %vm1776_vm7 = vmand %vm257_vm5, %vm206_vm3 }
  0x55   : > { %930 = vmatpush1.bf16.msra.mxu0 %v1451_v18  ;;  %1036 = vmatpush1.bf16.msra.mxu1 %v1452_v19  ;;  %v1494_v48 = vld [vmem:[#allocation3 + $0x168] ss:$16 sps:$4 sm:$0xff]   ;;  %v203_v49 = vld [vmem:[#allocation2] sm:$0x1]  ;;  %v1495_v50 = vld [vmem:[#allocation3 + $0x184] ss:$16 sps:$4 sm:$0xff]  }
  0x56   : > { %931 = vmatprep.subr.bf16.mxu0 %v1453_v20  ;;  %1037 = vmatprep.subr.bf16.mxu1 %v1455_v21  ;;  %v1497_v51 = vld [vmem:[#allocation3 + $0x18c] ss:$16 sps:$4 sm:$0xff]   ;;  %v204_v52 = vsel %vm1757_vm2, 0, %v203_v49  ;;  %v212_v54 = vld [vmem:[%s193_s20 + $0x4] sm:$0xf]  ;;  %vm1768_vm6 = vmor %vm201_vm0, %vm215_vm4  ;;  %s1358_s21 = sshll.u32 %s1852_s13, 7 }
  0x57   : > { %v211_v53 = vld [vmem:[%s193_s20] sm:$0xf]  ;;  %205 = vst [vmem:[#allocation2] sm:$0x1] %v204_v52  ;;  %v213_v55 = vld [vmem:[%s193_s20 + $0x8] sm:$0xf]  ;;  %vm207_vm8 = vmand %vm200_vm1, %vm206_vm3  ;;  %s1811_s24 = scalar_lea.vmem %s1835_s3, %s1358_s21 }
  0x58   : > { %v214_v56 = vld [vmem:[%s193_s20 + $0xc] sm:$0xf]  ;;  %v218_v57 = vshrl.u32 %v211_v53, 16  ;;  %v221_v58 = vshll.u32 %v211_v53, 16  ;;  %v226_v59 = vshrl.u32 %v212_v54, 16  ;;  %v229_v60 = vshll.u32 %v212_v54, 16 }
  0x59   : > { %932 = vmatpush1.bf16.msra.mxu0 %v1457_v22  ;;  %1038 = vmatpush1.bf16.msra.mxu1 %v1458_v23  ;;  %v235_v61 = vshrl.u32 %v213_v55, 16  ;;  %v238_v62 = vshll.u32 %v213_v55, 16  ;;  %v244_v0 = vshrl.u32 %v214_v56, 16  ;;  %v247_v1 = vshll.u32 %v214_v56, 16  ;;  %v1499_v2 = vld [vmem:[#allocation3 + $0x180] ss:$16 sps:$4 sm:$0xff]  }
  0x5a   : > { %933 = vmatprep.subr.bf16.mxu0 %v1459_v24  ;;  %1039 = vmatprep.subr.bf16.mxu1 %v1461_v25  ;;  %v220_v63 = vrot.slane %v218_v57, 7  ;;  %v228_v4 = vrot.slane %v226_v59, 7  ;;  %v1500_v6 = vld [vmem:[#allocation3 + $0x188] ss:$16 sps:$4 sm:$0xff]   ;;  %v1501_v10 = vld [vmem:[#allocation3 + $0x1a4] ss:$16 sps:$4 sm:$0xff]  }
  0x5b   : > { %v237_v5 = vrot.slane %v235_v61, 7  ;;  %v1772_v9 = vrot.slane %v244_v0, 7  ;;  %v1503_v11 = vld [vmem:[#allocation3 + $0x1ac] ss:$16 sps:$4 sm:$0xff]   ;;  %v1505_v18 = vld [vmem:[#allocation3 + $0x1a0] ss:$16 sps:$4 sm:$0xff]  }
  0x5c   : > { %v223_v7 = vor.u32 %v221_v58, %v220_v63  ;;  %v224_v8 = vrot.slane %v220_v63, 4  ;;  %v231_v12 = vor.u32 %v229_v60, %v228_v4  ;;  %v233_v13 = vrot.slane %v228_v4, 4  ;;  %v1506_v22 = vld [vmem:[#allocation3 + $0x1a8] ss:$16 sps:$4 sm:$0xff]   ;;  %v1507_v23 = vld [vmem:[#allocation3 + $0x1c4] ss:$16 sps:$4 sm:$0xff]  }
  0x5d   : > { %934 = vmatpush1.bf16.msra.mxu0 %v1463_v26  ;;  %1040 = vmatpush1.bf16.msra.mxu1 %v1464_v27  ;;  %v240_v14 = vor.u32 %v238_v62, %v237_v5  ;;  %v242_v15 = vrot.slane %v237_v5, 4  ;;  %v249_v17 = vor.u32 %v247_v1, %v1772_v9  ;;  %v1509_v26 = vld [vmem:[#allocation3 + $0x1cc] ss:$16 sps:$4 sm:$0xff]   ;;  %v1511_v27 = vld [vmem:[#allocation3 + $0x1c0] ss:$16 sps:$4 sm:$0xff]   ;;  %v251_v53 = vrot.slane %v1772_v9, 4 }
  0x5e   : > { %935 = vmatprep.subr.bf16.mxu0 %v1465_v28  ;;  %1041 = vmatprep.subr.bf16.mxu1 %v1467_v29  ;;  %v232_v19 = vsel %vm1768_vm6, %v224_v8, %v231_v12  ;;  %v259_v21 = vld [vmem:[#allocation2] sm:$0xf]  ;;  %v1512_v28 = vld [vmem:[#allocation3 + $0x1c8] ss:$16 sps:$4 sm:$0xff]   ;;  %v1513_v29 = vld [vmem:[#allocation3 + $0x1e4] ss:$16 sps:$4 sm:$0xff]  }
  0x5f   : > { %v241_v20 = vsel %vm1768_vm6, %v233_v13, %v240_v14  ;;  %v250_v24 = vsel %vm1768_vm6, %v242_v15, %v249_v17  ;;  %v260_v25 = vsel %vm1776_vm7, %v223_v7, %v259_v21  ;;  %262 = vst [vmem:[#allocation2 + $0x4] sm:$0xf] %v232_v19  ;;  %vm289_vm9 = vsmask.f32 7424  ;;  %v1524_v49 = vld [vmem:[#allocation3 + $0x208] ss:$16 sps:$4 sm:$0xff]  }
  0x60   : > { %263 = vst [vmem:[#allocation2 + $0x8] sm:$0xf] %v241_v20  ;;  %261 = vst [vmem:[#allocation2] sm:$0xf] %v260_v25  ;;  %v1532_v52 = vld [vmem:[#allocation3 + $0x22c] ss:$16 sps:$4 sm:$0xff]  }
  0x61   : > { %936 = vmatpush1.bf16.msra.mxu0 %v1469_v30  ;;  %1042 = vmatpush1.bf16.msra.mxu1 %v1470_v31  ;;  %264 = vst [vmem:[#allocation2 + $0xc] sm:$0xf] %v250_v24  ;;  %v1515_v30 = vld [vmem:[#allocation3 + $0x1ec] ss:$16 sps:$4 sm:$0xff]   ;;  %v1517_v31 = vld [vmem:[#allocation3 + $0x1e0] ss:$16 sps:$4 sm:$0xff]  }
  0x62   : > { %937 = vmatprep.subr.bf16.mxu0 %v1471_v32  ;;  %1043 = vmatprep.subr.bf16.mxu1 %v1473_v33  ;;  %v1518_v32 = vld [vmem:[#allocation3 + $0x1e8] ss:$16 sps:$4 sm:$0xff]   ;;  %v1527_v54 = vld [vmem:[#allocation3 + $0x220] ss:$16 sps:$4 sm:$0xff]   ;;  %v1535_v56 = vld [vmem:[#allocation3 + $0x244] ss:$16 sps:$4 sm:$0xff]  }
  0x63   : > { %v1530_v55 = vld [vmem:[#allocation3 + $0x228] ss:$16 sps:$4 sm:$0xff]   ;;  %v1538_v57 = vld [vmem:[#allocation3 + $0x24c] ss:$16 sps:$4 sm:$0xff]   ;;  %v1533_v60 = vld [vmem:[#allocation3 + $0x240] ss:$16 sps:$4 sm:$0xff]  }
  0x64   : > { %v1536_v61 = vld [vmem:[#allocation3 + $0x248] ss:$16 sps:$4 sm:$0xff]   ;;  %v1541_v62 = vld [vmem:[#allocation3 + $0x264] ss:$16 sps:$4 sm:$0xff]   ;;  %v1544_v63 = vld [vmem:[#allocation3 + $0x26c] ss:$16 sps:$4 sm:$0xff]  }
  0x65   : > { %938 = vmatpush1.bf16.msra.mxu0 %v1475_v34  ;;  %1044 = vmatpush1.bf16.msra.mxu1 %v1476_v35  ;;  %v1523_v34 = vld [vmem:[#allocation3 + $0x204] ss:$16 sps:$4 sm:$0xff]   ;;  %v1539_v0 = vld [vmem:[#allocation3 + $0x260] ss:$16 sps:$4 sm:$0xff]   ;;  %v1542_v1 = vld [vmem:[#allocation3 + $0x268] ss:$16 sps:$4 sm:$0xff]  }
  0x66   : > { %939 = vmatprep.subr.bf16.mxu0 %v1477_v36  ;;  %1045 = vmatprep.subr.bf16.mxu1 %v1479_v37  ;;  %v1789_v33 = vld [vmem:[#allocation2 + $0x4] sm:$0xf]  ;;  %v1547_v3 = vld [vmem:[#allocation3 + $0x284] ss:$16 sps:$4 sm:$0xff]   ;;  %v1550_v44 = vld [vmem:[#allocation3 + $0x28c] ss:$16 sps:$4 sm:$0xff]  }
  0x67   : > { %v268_v35 = vld [vmem:[#allocation2] sm:$0xf]  ;;  %v1545_v5 = vld [vmem:[#allocation3 + $0x280] ss:$16 sps:$4 sm:$0xff]   ;;  %v1553_v9 = vld [vmem:[#allocation3 + $0x2a4] ss:$16 sps:$4 sm:$0xff]  }
  0x68   : > { %v1791_v36 = vld [vmem:[#allocation2 + $0x8] sm:$0xff]   ;;  %v1255_v37 = vcombine.low %v268_v35, %v1789_v33  ;;  %v1551_v12 = vld [vmem:[#allocation3 + $0x2a0] ss:$16 sps:$4 sm:$0xff]   ;;  %v1563_v16 = vld [vmem:[#allocation3 + $0x2cc] ss:$16 sps:$4 sm:$0xff]  }
  0x69   : > { %940 = vmatpush1.bf16.msra.mxu0 %v1481_v38  ;;  %1046 = vmatpush1.bf16.msra.mxu1 %v1482_v39  ;;  %v1526_v38 = vld [vmem:[#allocation3 + $0x20c] ss:$16 sps:$4 sm:$0xff]   ;;  %v298_v39 = vshll.u32 %v1791_v36, 16  ;;  %v1554_v13 = vld [vmem:[#allocation3 + $0x2a8] ss:$16 sps:$4 sm:$0xff]  }
  0x6a   : > { %941 = vmatprep.subr.bf16.mxu0 %v1483_v40  ;;  %1047 = vmatprep.subr.bf16.mxu1 %v1485_v41  ;;  %v291_v40 = vshrl.u32 %v1255_v37, 16  ;;  %v293_v41 = vshll.u32 %v1255_v37, 16  ;;  %v1560_v15 = vld [vmem:[#allocation3 + $0x2c4] ss:$16 sps:$4 sm:$0xff]   ;;  %v273_v17 = vld [vmem:[#allocation2] sm:$0xe] }
  0x6b   : > { %v1561_v19 = vld [vmem:[#allocation3 + $0x2c8] ss:$16 sps:$4 sm:$0xff]   ;;  %v1258_v20 = vcombine.low %v273_v17, %v1789_v33  ;;  %v1566_v21 = vld [vmem:[#allocation3 + $0x2e4] ss:$16 sps:$4 sm:$0xff]   ;;  %v1564_v24 = vld [vmem:[#allocation3 + $0x2e0] ss:$16 sps:$4 sm:$0xff]  }
  0x6c   : > { %v1567_v25 = vld [vmem:[#allocation3 + $0x2e8] ss:$16 sps:$4 sm:$0xff]   ;;  %v419_v35 = vld [vmem:[#allocation5] sm:$0xf] }
  0x6d   : > { %942 = vmatpush1.bf16.msra.mxu0 %v1487_v42  ;;  %1048 = vmatpush1.bf16.msra.mxu1 %v1488_v43  ;;  %v208_v42 = vld [vmem:[#allocation2 + $0x10] sm:$0x1]  ;;  %v295_v43 = vrot.slane %v293_v41, 1 }
  0x6e   : > { %943 = vmatprep.subr.bf16.mxu0 %v1489_v45  ;;  %1049 = vmatprep.subr.bf16.mxu1 %v1491_v46  ;;  %v300_v45 = vrot.slane %v298_v39, 1  ;;  %v209_v46 = vsel %vm207_vm8, 0, %v208_v42 }
  0x6f   : > { %210 = vst [vmem:[#allocation2 + $0x10] sm:$0x1] %v209_v46 }
  0x71   : > { %944 = vmatpush1.bf16.msra.mxu0 %v1493_v47  ;;  %1050 = vmatpush1.bf16.msra.mxu1 %v1494_v48  ;;  %v296_v47 = vor.u32 %v295_v43, %v291_v40  ;;  %v1521_v48 = vld [vmem:[#allocation3 + $0x200] ss:$16 sps:$4 sm:$0xff]  }
  0x72   : > { %945 = vmatprep.subr.bf16.mxu0 %v1495_v50  ;;  %1051 = vmatprep.subr.bf16.mxu1 %v1497_v51  ;;  %v1529_v51 = vld [vmem:[#allocation3 + $0x224] ss:$16 sps:$4 sm:$0xff]  }
  0x73   : > { %v301_v50 = vsel %vm289_vm9, %v296_v47, %v300_v45 }
  0x74   : > { %953 = vmatprep.mubr.bf16.mxu0 %v301_v50  ;;  %1059 = vmatprep.mubr.bf16.mxu1 %v301_v50 }
  0x75   : > { %946 = vmatpush1.bf16.msra.mxu0 %v1499_v2  ;;  %1052 = vmatpush1.bf16.msra.mxu1 %v1500_v6  ;;  %v302_v2 = vshrl.u32 %v1791_v36, 16  ;;  %v1548_v6 = vld [vmem:[#allocation3 + $0x288] ss:$16 sps:$4 sm:$0xff]  }
  0x76   : > { %947 = vmatprep.subr.bf16.mxu0 %v1501_v10  ;;  %1053 = vmatprep.subr.bf16.mxu1 %v1503_v11  ;;  %v265_v58 = vld [vmem:[#allocation2 + $0x10] sm:$0x1] }
  0x77   : > { %v266_v59 = vsel %vm1757_vm2, %v251_v53, %v265_v58  ;;  %v304_v7 = vor.u32 %v302_v2, %v300_v45  ;;  %v1556_v10 = vld [vmem:[#allocation3 + $0x2ac] ss:$16 sps:$4 sm:$0xff]  }
  0x78   : > { %267 = vst [vmem:[#allocation2 + $0x10] sm:$0x1] %v266_v59 }
  0x79   : > { %948 = vmatpush1.bf16.msra.mxu0 %v1505_v18  ;;  %1054 = vmatpush1.bf16.msra.mxu1 %v1506_v22  ;;  %v1558_v18 = vld [vmem:[#allocation3 + $0x2c0] ss:$16 sps:$4 sm:$0xff]   ;;  %v1569_v22 = vld [vmem:[#allocation3 + $0x2ec] ss:$16 sps:$4 sm:$0xff]  }
  0x7a   : > { %949 = vmatprep.subr.bf16.mxu0 %v1507_v23  ;;  %1055 = vmatprep.subr.bf16.mxu1 %v1509_v26  ;;  %v1647_v23 = vmov 0   ;;  %v316_v26 = vrot.slane %v1258_v20, 1 }
  0x7d   : > { %950 = vmatpush1.bf16.msra.mxu0 %v1511_v27  ;;  %1056 = vmatpush1.bf16.msra.mxu1 %v1512_v28  ;;  %v317_v27 = vrot.slane %v1791_v36, 1 }
  0x7e   : > { %951 = vmatprep.subr.bf16.mxu0 %v1513_v29  ;;  %1057 = vmatprep.subr.bf16.mxu1 %v1515_v30 }
  0x7f   : > { %v1557_v4 = vld [vmem:[#allocation2 + $0x10] ss:$0 sps:$4 sm:$0x11]   ;;  %v318_v28 = vsel %vm315_vm10, %v316_v26, %v317_v27 }
  0x80   : > { %v306_v8 = vshll.u32 %v1557_v4, 16  ;;  %v319_v29 = vrot.slane %v1557_v4, 1 }
  0x81   : > { %952 = vmatpush1.bf16.msra.mxu0 %v1517_v31  ;;  %1058 = vmatpush1.bf16.msra.mxu1 %v1518_v32  ;;  %v421_v31 = vlaneseq }
  0x82   : > { %974 = vmatprep.subr.bf16.mxu0 %v1523_v34  ;;  %1080 = vmatprep.subr.bf16.mxu1 %v1526_v38  ;;  %v308_v11 = vrot.slane %v306_v8, 1  ;;  %v320_v30 = vsel %vm315_vm10, %v317_v27, %v319_v29 }
  0x83   : > { %v422_v32 = vshrl.u32 %v421_v31, 7 }
  0x84   : > { %954 = vmatmul.mubr.bf16.vlgmr.msra.gmra.mrb[0].mxu0 %v1255_v37  ;;  %1060 = vmatmul.mubr.bf16.vlgmr.msra.gmra.mrb[0].mxu1 %v1255_v37  ;;  %v309_v14 = vsel %vm289_vm9, %v304_v7, %v308_v11 }
  0x85   : > { %975 = vmatpush1.bf16.msra.mxu0 %v1521_v48  ;;  %1081 = vmatpush1.bf16.msra.mxu1 %v1524_v49  ;;  %v423_v33 = vsub.s32 0, %v422_v32  ;;  %v431_v34 = vsub.s32 2, %v422_v32  ;;  %v435_v37 = vsub.s32 3, %v422_v32 }
  0x86   : > { %976 = vmatprep.subr.bf16.mxu0 %v1529_v51  ;;  %1082 = vmatprep.subr.bf16.mxu1 %v1532_v52 }
  0x87   : > { %963 = vmatprep.mubr.bf16.mxu0 %v309_v14  ;;  %1069 = vmatprep.mubr.bf16.mxu1 %v309_v14  ;;  %v424_v38 = vrot.slane %v419_v35, %v423_v33  ;;  %v432_v39 = vrot.slane %v419_v35, %v431_v34  ;;  %v436_v41 = vrot.slane %v419_v35, %v435_v37 }
  0x89   : > { %977 = vmatpush1.bf16.msra.mxu0 %v1527_v54  ;;  %1083 = vmatpush1.bf16.msra.mxu1 %v1530_v55 }
  0x8a   : > { %978 = vmatprep.subr.bf16.mxu0 %v1535_v56  ;;  %1084 = vmatprep.subr.bf16.mxu1 %v1538_v57 }
  0x8c   : > { %964 = vmatmul.mubr.bf16.gmra.mrb[4].mxu0 %v1791_v36  ;;  %1070 = vmatmul.mubr.bf16.gmra.mrb[4].mxu1 %v1791_v36  ;;  %v427_v36 = vsub.s32 1, %v422_v32 }
  0x8d   : > { %979 = vmatpush1.bf16.msra.mxu0 %v1533_v60  ;;  %1085 = vmatpush1.bf16.msra.mxu1 %v1536_v61 }
  0x8e   : > { %980 = vmatprep.subr.bf16.mxu0 %v1541_v62  ;;  %1086 = vmatprep.subr.bf16.mxu1 %v1544_v63  ;;  %v428_v40 = vrot.slane %v419_v35, %v427_v36 }
  0x8f   : > { %1006 = vmatprep.mubr.bf16.mxu0 %v1647_v23  ;;  %1112 = vmatprep.mubr.bf16.mxu1 %v1647_v23 }
  0x91   : > { %981 = vmatpush1.bf16.msra.mxu0 %v1539_v0  ;;  %1087 = vmatpush1.bf16.msra.mxu1 %v1542_v1 }
  0x92   : > { %982 = vmatprep.subr.bf16.mxu0 %v1547_v3  ;;  %1088 = vmatprep.subr.bf16.mxu1 %v1550_v44 }
  0x95   : > { %983 = vmatpush1.bf16.msra.mxu0 %v1545_v5  ;;  %1089 = vmatpush1.bf16.msra.mxu1 %v1548_v6 }
  0x96   : > { %984 = vmatprep.subr.bf16.mxu0 %v1553_v9  ;;  %1090 = vmatprep.subr.bf16.mxu1 %v1556_v10 }
  0x99   : > { %985 = vmatpush1.bf16.msra.mxu0 %v1551_v12  ;;  %1091 = vmatpush1.bf16.msra.mxu1 %v1554_v13 }
  0x9a   : > { %986 = vmatprep.subr.bf16.mxu0 %v1560_v15  ;;  %1092 = vmatprep.subr.bf16.mxu1 %v1563_v16 }
  0x9d   : > { %987 = vmatpush1.bf16.msra.mxu0 %v1558_v18  ;;  %1093 = vmatpush1.bf16.msra.mxu1 %v1561_v19 }
  0x9e   : > { %988 = vmatprep.subr.bf16.mxu0 %v1566_v21  ;;  %1094 = vmatprep.subr.bf16.mxu1 %v1569_v22 }
  0xa1   : > { %989 = vmatpush1.bf16.msra.mxu0 %v1564_v24  ;;  %1095 = vmatpush1.bf16.msra.mxu1 %v1567_v25 }
  0xa4   : > { %1007 = vmatmul.mubr.bf16.vlgmr.msra.gmra.mrb[0].mxu0 %v318_v28  ;;  %1113 = vmatmul.mubr.bf16.vlgmr.msra.gmra.mrb[0].mxu1 %v318_v28 }
  0xa5   : > { %1016 = vmatprep.mubr.bf16.mxu0 %v1647_v23  ;;  %1122 = vmatprep.mubr.bf16.mxu1 %v1647_v23 }
  0xac   : > { %1017 = vmatmul.mubr.bf16.gmra.mrb[4].mxu0 %v320_v30  ;;  %1123 = vmatmul.mubr.bf16.gmra.mrb[4].mxu1 %v320_v30 }
 0x177   : > { %v1008_v42 = vpop.f32.mrb[0].mxu0  ;;  %v1114_v43 = vpop.f32.mrb[0].mxu1 }
 0x178   : > { %v1359_v45 = vadd.f32 %v1008_v42, %v424_v38  ;;  %v1367_v46 = vadd.f32 %v1114_v43, %v432_v39  ;;  %v1010_v47 = vpop.f32.mrb[1].mxu0  ;;  %v1116_v48 = vpop.f32.mrb[1].mxu1 }
 0x179   : > { %v1360_v49 = vadd.f32 %v1010_v47, %v428_v40  ;;  %v1368_v50 = vadd.f32 %v1116_v48, %v436_v41  ;;  %v1012_v51 = vpop.f32.mrb[2].mxu0  ;;  %v1118_v52 = vpop.f32.mrb[2].mxu1 }
 0x17a   : > { %v1133_v53 = vmax.f32 %v1359_v45, 0.0  ;;  %v1135_v54 = vmax.f32 %v1367_v46, 0.0  ;;  %v1361_v55 = vadd.f32 %v1012_v51, %v424_v38  ;;  %v1369_v56 = vadd.f32 %v1118_v52, %v432_v39  ;;  %v1014_v57 = vpop.f32.mrb[3].mxu0  ;;  %v1120_v58 = vpop.f32.mrb[3].mxu1 }
 0x17b   : > { %v1134_v59 = vmax.f32 %v1360_v49, 0.0  ;;  %v1136_v60 = vmax.f32 %v1368_v50, 0.0  ;;  %v1362_v61 = vadd.f32 %v1014_v57, %v428_v40  ;;  %v1370_v62 = vadd.f32 %v1120_v58, %v436_v41 }
 0x17c   : > { %1149 = vst [vmem:[%s1811_s24] sm:$0xff] %v1133_v53  ;;  %1151 = vst [vmem:[%s1811_s24 + $0x10] sm:$0xff] %v1135_v54  ;;  %v1137_v63 = vmax.f32 %v1361_v55, 0.0  ;;  %v1139_v0 = vmax.f32 %v1369_v56, 0.0 }
 0x17d   : > { %1150 = vst [vmem:[%s1811_s24 + $0x8] sm:$0xff] %v1134_v59  ;;  %1152 = vst [vmem:[%s1811_s24 + $0x18] sm:$0xff] %v1136_v60  ;;  %v1138_v1 = vmax.f32 %v1362_v61, 0.0  ;;  %v1140_v2 = vmax.f32 %v1370_v62, 0.0 }
 0x17e   : > { %1153 = vst [vmem:[%s1811_s24 + $0x20] sm:$0xff] %v1137_v63  ;;  %1155 = vst [vmem:[%s1811_s24 + $0x30] sm:$0xff] %v1139_v0 }
 0x17f   : > { %1154 = vst [vmem:[%s1811_s24 + $0x28] sm:$0xff] %v1138_v1  ;;  %1156 = vst [vmem:[%s1811_s24 + $0x38] sm:$0xff] %v1140_v2  ;;  %v1018_v3 = vpop.f32.mrb[4].mxu0  ;;  %v1124_v44 = vpop.f32.mrb[4].mxu1 }
 0x180   : > { %v1363_v4 = vadd.f32 %v1018_v3, %v424_v38  ;;  %v1371_v5 = vadd.f32 %v1124_v44, %v432_v39  ;;  %v1020_v6 = vpop.f32.mrb[5].mxu0  ;;  %v1126_v7 = vpop.f32.mrb[5].mxu1 }
 0x181   : > { %v1364_v8 = vadd.f32 %v1020_v6, %v428_v40  ;;  %v1372_v9 = vadd.f32 %v1126_v7, %v436_v41  ;;  %v1022_v10 = vpop.f32.mrb[6].mxu0  ;;  %v1128_v11 = vpop.f32.mrb[6].mxu1 }
 0x182   : > { %v1141_v12 = vmax.f32 %v1363_v4, 0.0  ;;  %v1143_v13 = vmax.f32 %v1371_v5, 0.0  ;;  %v1365_v14 = vadd.f32 %v1022_v10, %v424_v38  ;;  %v1373_v15 = vadd.f32 %v1128_v11, %v432_v39  ;;  %v1024_v16 = vpop.f32.mrb[7].mxu0  ;;  %v1130_v17 = vpop.f32.mrb[7].mxu1 }
 0x183   : > { %v1142_v18 = vmax.f32 %v1364_v8, 0.0  ;;  %v1144_v19 = vmax.f32 %v1372_v9, 0.0  ;;  %v1366_v20 = vadd.f32 %v1024_v16, %v428_v40  ;;  %v1374_v21 = vadd.f32 %v1130_v17, %v436_v41 }
 0x184   : > { %1157 = vst [vmem:[%s1811_s24 + $0x40] sm:$0xff] %v1141_v12  ;;  %1159 = vst [vmem:[%s1811_s24 + $0x50] sm:$0xff] %v1143_v13  ;;  %v1145_v22 = vmax.f32 %v1365_v14, 0.0  ;;  %v1147_v23 = vmax.f32 %v1373_v15, 0.0 }
 0x185   : > { %1158 = vst [vmem:[%s1811_s24 + $0x48] sm:$0xff] %v1142_v18  ;;  %1160 = vst [vmem:[%s1811_s24 + $0x58] sm:$0xff] %v1144_v19  ;;  %v1146_v24 = vmax.f32 %v1366_v20, 0.0  ;;  %v1148_v25 = vmax.f32 %v1374_v21, 0.0 }
 0x186   : > { %1161 = vst [vmem:[%s1811_s24 + $0x60] sm:$0xff] %v1145_v22  ;;  %1163 = vst [vmem:[%s1811_s24 + $0x70] sm:$0xff] %v1147_v23 }
 0x187   : > { %1162 = vst [vmem:[%s1811_s24 + $0x68] sm:$0xff] %v1146_v24  ;;  %1164 = vst [vmem:[%s1811_s24 + $0x78] sm:$0xff] %v1148_v25 }
 0x188 PF: > { %s15_s12 = sadd.s32 1, %s1641_s12  }
 0x189   : > { %p12_p9 = scmp.ge.s32.totalorder %s15_s12, 4  }
 0x18b   :  { %14 = sbr.rel (!%p12_p9) target bundleno = 2 (0x2), region = 71 }
 0x192   :  { %1186 = vsyncpa [#allocation4], 1 }
 0x193   :  { %1188 = vsyncpa [#allocation4 + $0x1], 1 }
 0x194   :  { %1189 = vsyncpa [#allocation6], 1 }

</bundles_post_ra>
